<compile_context>
chip_gen: v6e
topology: v6e:2x2x1
jax: 0.10.0
libtpu: 0.0.40
codegen_flags: <defaults>
</compile_context>

<pallas_src>
import functools

import jax
import jax.numpy as jnp
from jax.experimental import pallas as pl
from jax.experimental.pallas import tpu as pltpu


def _round_up(a, m):
    return ((a + m - 1) // m) * m


def _pad_gate_rows(w, H, Hp):
    """(4H, X) -> (4Hp, X), zero-padding each of the i/f/g/o blocks H -> Hp."""
    X = w.shape[1]
    return jnp.pad(w.reshape(4, H, X),
                   ((0, 0), (0, Hp - H), (0, 0))).reshape(4 * Hp, X)


def _pad_gate_vec(b, H, Hp):
    """(4H,) -> (4Hp,), zero-padding each gate block H -> Hp."""
    return jnp.pad(b.reshape(4, H), ((0, 0), (0, Hp - H))).reshape(4 * Hp)


# ----------------------------------------------------------------------------
# Kernel 1: init_state  ->  tanh(z @ W_init + b)        (weights pre-transposed)
# ----------------------------------------------------------------------------
def _init_state_kernel(z_ref, w_ref, b_ref, o_ref):
    o_ref[...] = jnp.tanh(
        jnp.dot(z_ref[...], w_ref[...], preferred_element_type=jnp.float32)
        + b_ref[...]
    )


def init_state_call(z, w_init_t, b_init_row):
    B = z.shape[0]
    N = w_init_t.shape[1]
    return pl.pallas_call(
        _init_state_kernel,
        out_shape=jax.ShapeDtypeStruct((B, N), jnp.float32),
    )(z, w_init_t, b_init_row)


# ----------------------------------------------------------------------------
# Kernel 2: fused LSTM recurrence (PyTorch gate order i, f, g, o)
#   - input projection x @ W_ih + (b_ih + b_hh) computed in-kernel per chunk
#     into VMEM scratch (one big MXU push, no HBM intermediate)
#   - one MXU matmul per step: h @ W_hh  (W_hh pre-transposed to (Hp, 4Hp))
#   - time-chunked grid, h/c live in VMEM scratch across the whole grid
# ----------------------------------------------------------------------------
def _lstm_kernel(x_ref, wih_ref, whh_ref, bias_ref, h0_ref, c0_ref,
                 out_ref, hN_ref, cN_ref, h_sc, c_sc, xp_sc, *, unroll):
    @pl.when(pl.program_id(0) == 0)
    def _():
        h_sc[...] = h0_ref[...]
        c_sc[...] = c0_ref[...]

    Tc, Bp, F = x_ref.shape
    G = whh_ref.shape[1]          # 4 * Hp
    Hp = G // 4

    # Fused input-to-hidden projection for the whole chunk: one lane-dense
    # (Tc*Bp, F) x (F, 4Hp) matmul, kept in VMEM scratch.  Bp is a multiple of
    # 8, so the leading-dim merge/split is a free relayout.
    xp_sc[...] = (
        jnp.dot(x_ref[...].reshape(Tc * Bp, F), wih_ref[...],
                preferred_element_type=jnp.float32)
        + bias_ref[...]
    ).reshape(Tc, Bp, G)

    whh = whh_ref[...]            # (Hp, 4Hp), loaded once per chunk

    def step(t, carry):
        # gates = x_t@W_ih + b  (precomputed above) + h@W_hh
        gates = xp_sc[t] + jnp.dot(h_sc[...], whh,
                                   preferred_element_type=jnp.float32)
        # Hp is a multiple of 128 -> all four gate slices are lane-aligned.
        i = jax.nn.sigmoid(gates[:, 0:Hp])
        f = jax.nn.sigmoid(gates[:, Hp:2 * Hp])
        g = jnp.tanh(gates[:, 2 * Hp:3 * Hp])
        o = jax.nn.sigmoid(gates[:, 3 * Hp:4 * Hp])
        c_new = f * c_sc[...] + i * g
        h_new = o * jnp.tanh(c_new)
        h_sc[...] = h_new
        c_sc[...] = c_new
        out_ref[t] = h_new
        return carry

    # Partial unroll keeps LLO scheduling visibility without blowing the
    # 64-vreg file at large H (review: sweep 2/4/8 instead of full unroll).
    jax.lax.fori_loop(0, Tc, step, 0, unroll=unroll)

    # Same block every grid step -> final chunk's values persist.
    hN_ref[...] = h_sc[...]
    cN_ref[...] = c_sc[...]


def lstm_call(x, w_ih_t, w_hh_t, bias, h0, c0, *, time_chunk=32, unroll=4):
    T, Bp, F = x.shape
    Hp = h0.shape[-1]
    G = 4 * Hp
    Tc = min(T, time_chunk)
    # Tc is the LEADING block dim (no (8,128) constraint); it only needs to
    # divide T so every chunk runs a full recurrence segment.
    while T % Tc:
        Tc -= 1

    grid_spec = pltpu.PrefetchScalarGridSpec(
        num_scalar_prefetch=0,
        grid=(T // Tc,),
        in_specs=[
            pl.BlockSpec((Tc, Bp, F), lambda i: (i, 0, 0)),
            # Grid-invariant weights/bias/initial state.  For production sizes
            # cast these to bf16 and add pipeline_mode=pl.Buffered(1) to fit
            # v7x's 64 MiB VMEM.
            pl.BlockSpec((F, G), lambda i: (0, 0)),
            pl.BlockSpec((Hp, G), lambda i: (0, 0)),
            pl.BlockSpec((1, G), lambda i: (0, 0)),
            pl.BlockSpec((Bp, Hp), lambda i: (0, 0)),
            pl.BlockSpec((Bp, Hp), lambda i: (0, 0)),
        ],
        out_specs=[
            pl.BlockSpec((Tc, Bp, Hp), lambda i: (i, 0, 0)),
            pl.BlockSpec((Bp, Hp), lambda i: (0, 0)),
            pl.BlockSpec((Bp, Hp), lambda i: (0, 0)),
        ],
        scratch_shapes=[
            pltpu.VMEM((Bp, Hp), jnp.float32),      # h
            pltpu.VMEM((Bp, Hp), jnp.float32),      # c
            pltpu.VMEM((Tc, Bp, G), jnp.float32),   # projected inputs (chunk)
        ],
    )
    return pl.pallas_call(
        functools.partial(_lstm_kernel, unroll=unroll),
        out_shape=(jax.ShapeDtypeStruct((T, Bp, Hp), jnp.float32),
                   jax.ShapeDtypeStruct((Bp, Hp), jnp.float32),
                   jax.ShapeDtypeStruct((Bp, Hp), jnp.float32)),
        grid_spec=grid_spec,
        compiler_params=pltpu.CompilerParams(
            dimension_semantics=("arbitrary",),      # true recurrence
            vmem_limit_bytes=64 * 1024 * 1024),
    )(x, w_ih_t, w_hh_t, bias, h0, c0)


# ----------------------------------------------------------------------------
# Kernel 3: fused heads -- ONE matmul against the concatenated [W_q | W_m]
# weight (padded to >=128 lanes), one lane-dense output slab.  log_softmax is
# applied to the first nq columns, exp/tanh to the sigma/rho column ranges,
# all via lane masks; the 7-way split is wrapper-side layout plumbing.
# ----------------------------------------------------------------------------
def _heads_kernel(h_ref, w_ref, b_ref, o_ref, *, nq, nm):
    y = (jnp.dot(h_ref[...], w_ref[...], preferred_element_type=jnp.float32)
         + b_ref[...])
    col = jax.lax.broadcasted_iota(jnp.int32, y.shape, 1)
    m = nm // 6

    # q_head + log_softmax restricted to the first nq columns.
    is_q = col < nq
    q_max = jnp.max(jnp.where(is_q, y, -jnp.inf), axis=-1, keepdims=True)
    q_sum = jnp.sum(jnp.where(is_q, jnp.exp(y - q_max), 0.0),
                    axis=-1, keepdims=True)
    q_ls = y - (q_max + jnp.log(q_sum))

    # Mixture nonlinearities: exp on sigma_x/sigma_y blocks, tanh on rho.
    # (Transcendentals over the full slab + select; EUP has its own VLIW slot
    # so this is free filler unless M is very large.)
    is_sigma = (col >= nq + 3 * m) & (col < nq + 5 * m)
    is_rho = (col >= nq + 5 * m) & (col < nq + 6 * m)
    mix = jnp.where(is_sigma, jnp.exp(y), jnp.where(is_rho, jnp.tanh(y), y))

    o_ref[...] = jnp.where(is_q, q_ls, mix)


def heads_call(h_flat, w_t, b_row, *, nq, nm, row_tile=512):
    R, Hp = h_flat.shape
    Np = w_t.shape[1]
    # Row tile: 8-aligned; pad R up to a multiple of it (no divisor search).
    rt = min(row_tile, _round_up(R, 8))
    Rp = _round_up(R, rt)
    if Rp != R:
        h_flat = jnp.pad(h_flat, ((0, Rp - R), (0, 0)))

    grid_spec = pltpu.PrefetchScalarGridSpec(
        num_scalar_prefetch=0,
        grid=(Rp // rt,),
        in_specs=[
            pl.BlockSpec((rt, Hp), lambda i: (i, 0)),
            pl.BlockSpec((Hp, Np), lambda i: (0, 0)),   # grid-invariant weight
            pl.BlockSpec((1, Np), lambda i: (0, 0)),    # grid-invariant bias
        ],
        out_specs=pl.BlockSpec((rt, Np), lambda i: (i, 0)),
    )
    out = pl.pallas_call(
        functools.partial(_heads_kernel, nq=nq, nm=nm),
        out_shape=jax.ShapeDtypeStruct((Rp, Np), jnp.float32),
        grid_spec=grid_spec,
        compiler_params=pltpu.CompilerParams(
            dimension_semantics=("parallel",)),         # v7x megacore-shardable
    )(h_flat, w_t, b_row)
    return out[:R]


# ----------------------------------------------------------------------------
# Full DecoderRNN.forward
# ----------------------------------------------------------------------------
def decoder_rnn_forward(x, z, state, params, dec_hidden_size, n_distributions,
                        *, time_chunk=32, row_tile=512, lstm_unroll=4):
    T, B, F = x.shape
    H = dec_hidden_size
    M = n_distributions

    # Lane/sublane-aligned padded sizes (exactness of zero padding: padded h/c
    # lanes stay 0 through the recurrence, padded batch rows are sliced off).
    Hp = _round_up(H, 128)
    Bp = _round_up(B, 8)
    G = 4 * Hp

    # --- pad / pre-transpose weights once (trace-time, free) ---
    w_ih_t = _pad_gate_rows(params["w_ih"], H, Hp).T                 # (F, 4Hp)
    w_hh_p = _pad_gate_rows(params["w_hh"], H, Hp)                   # (4Hp, H)
    w_hh_t = jnp.pad(w_hh_p, ((0, 0), (0, Hp - H))).T                # (Hp, 4Hp)
    bias = _pad_gate_vec(params["b_ih"] + params["b_hh"], H, Hp).reshape(1, G)

    # Fused heads weight: [W_q ; W_m] -> (Hp, Np) with Np a multiple of 128.
    NQ, NM = 3, 6 * M
    Np = _round_up(NQ + NM, 128)
    w_heads = jnp.concatenate([params["w_q"], params["w_m"]], axis=0)  # (NQ+NM, H)
    w_heads = jnp.pad(w_heads, ((0, Np - NQ - NM), (0, Hp - H))).T     # (Hp, Np)
    b_heads = jnp.pad(jnp.concatenate([params["b_q"], params["b_m"]]),
                      (0, Np - NQ - NM)).reshape(1, Np)

    # --- initial state ---
    if state is None:
        hc = init_state_call(z, params["w_init"].T,
                             params["b_init"].reshape(1, 2 * H))       # (B, 2H)
        h0, c0 = hc[:, :H], hc[:, H:]
    else:
        h0, c0 = state[0][0], state[1][0]
    h0p = jnp.pad(h0, ((0, Bp - B), (0, Hp - H)))
    c0p = jnp.pad(c0, ((0, Bp - B), (0, Hp - H)))
    x_p = jnp.pad(x, ((0, 0), (0, Bp - B), (0, 0)))

    # Sequential recurrence with in-kernel input projection.
    outputs, hN, cN = lstm_call(x_p, w_ih_t, w_hh_t, bias, h0p, c0p,
                                time_chunk=time_chunk, unroll=lstm_unroll)

    # Fused output heads (single lane-dense store).
    heads = heads_call(outputs.reshape(T * Bp, Hp), w_heads, b_heads,
                       nq=NQ, nm=NM, row_tile=row_tile)
    heads = heads.reshape(T, Bp, Np)[:, :B, :]

    q_logits = heads[..., :NQ]
    mix = heads[..., NQ:NQ + NM]
    pi, mux, muy, sx, sy, rho = jnp.split(mix, 6, axis=-1)
    # TODO(synk): torch.distributions construction (BivariateGaussianMixture.
    # get_distribution / set_temperature) has no Pallas equivalent; we return
    # the raw mixture parameter tensors instead.
    dist = dict(pi_logits=pi, mu_x=mux, mu_y=muy,
                sigma_x=sx, sigma_y=sy, rho_xy=rho)
    new_state = (hN[:B, :H][None], cN[:B, :H][None])
    return dist, q_logits, new_state


# ----------------------------------------------------------------------------
# Pure-JAX reference (for correctness check) -- highest matmul precision so a
# tight tolerance is meaningful for fp32.
# ----------------------------------------------------------------------------
def reference_forward(x, z, params, H, M, state=None):
    hp = lambda a, b: jnp.dot(a, b, precision=jax.lax.Precision.HIGHEST)
    if state is None:
        hc = jnp.tanh(hp(z, params["w_init"].T) + params["b_init"])
        h, c = hc[:, :H], hc[:, H:]
    else:
        h, c = state[0][0], state[1][0]
    w_ih, w_hh = params["w_ih"], params["w_hh"]
    b = params["b_ih"] + params["b_hh"]

    def step(carry, x_t):
        h, c = carry
        gates = hp(x_t, w_ih.T) + hp(h, w_hh.T) + b
        i, f, g, o = jnp.split(gates, 4, axis=-1)
        c = jax.nn.sigmoid(f) * c + jax.nn.sigmoid(i) * jnp.tanh(g)
        h = jax.nn.sigmoid(o) * jnp.tanh(c)
        return (h, c), h

    (hN, cN), outs = jax.lax.scan(step, (h, c), x)
    q = jax.nn.log_softmax(hp(outs, params["w_q"].T) + params["b_q"], axis=-1)
    mix = hp(outs, params["w_m"].T) + params["b_m"]
    pi, mux, muy, sx, sy, rho = jnp.split(mix, 6, axis=-1)
    return (dict(pi_logits=pi, mu_x=mux, mu_y=muy, sigma_x=jnp.exp(sx),
                 sigma_y=jnp.exp(sy), rho_xy=jnp.tanh(rho)),
            q, (hN[None], cN[None]))


# ----------------------------------------------------------------------------
# Main
# ----------------------------------------------------------------------------
if __name__ == "__main__":
    d_z = 16
    H = 32                 # dec_hidden_size
    M = 4                  # n_distributions
    T, B = 8, 2            # seq_len, batch
    F = d_z + 5            # LSTM input size

    key = jax.random.PRNGKey(0)
    ks = jax.random.split(key, 12)
    u = lambda k, shape, bound: jax.random.uniform(
        k, shape, jnp.float32, -bound, bound)

    kH = 1.0 / (H ** 0.5)
    kZ = 1.0 / (d_z ** 0.5)
    params = {
        # nn.LSTM(d_z + 5, H)
        "w_ih": u(ks[0], (4 * H, F), kH),
        "w_hh": u(ks[1], (4 * H, H), kH),
        "b_ih": u(ks[2], (4 * H,), kH),
        "b_hh": u(ks[3], (4 * H,), kH),
        # nn.Linear(d_z, 2H)
        "w_init": u(ks[4], (2 * H, d_z), kZ),
        "b_init": u(ks[5], (2 * H,), kZ),
        # nn.Linear(H, 6M)
        "w_m": u(ks[6], (6 * M, H), kH),
        "b_m": u(ks[7], (6 * M,), kH),
        # nn.Linear(H, 3)
        "w_q": u(ks[8], (3, H), kH),
        "b_q": u(ks[9], (3,), kH),
    }

    x = jax.random.normal(ks[10], (T, B, F), jnp.float32)
    z = jax.random.normal(ks[11], (B, d_z), jnp.float32)

    names = ("pi_logits", "mu_x", "mu_y", "sigma_x", "sigma_y", "rho_xy")
    TOL = dict(rtol=1e-4, atol=1e-4)

    # Pass 1: state=None (exercises the init_state path).
    dist, q_logits, state = decoder_rnn_forward(x, z, None, params, H, M)
    jax.block_until_ready((dist, q_logits, state))
    r_dist, r_q, r_state = reference_forward(x, z, params, H, M, state=None)
    for name in names:
        assert jnp.allclose(dist[name], r_dist[name], **TOL), name
    assert jnp.allclose(q_logits, r_q, **TOL)
    assert jnp.allclose(state[0], r_state[0], **TOL)
    assert jnp.allclose(state[1], r_state[1], **TOL)

    # Pass 2: reuse the returned state (exercises the state-provided path).
    dist2, q2, state2 = decoder_rnn_forward(x, z, state, params, H, M)
    jax.block_until_ready((dist2, q2, state2))
    r_dist2, r_q2, r_state2 = reference_forward(x, z, params, H, M, state=r_state)
    for name in names:
        assert jnp.allclose(dist2[name], r_dist2[name], **TOL), name
    assert jnp.allclose(q2, r_q2, **TOL)
    assert jnp.allclose(state2[0], r_state2[0], **TOL)
    assert jnp.allclose(state2[1], r_state2[1], **TOL)

    print("KERNEL_OK")
</pallas_src>

<mosaic_0001>
module attributes {stable_mosaic.version = 11 : i64} {
  func.func @_init_state_kernel(%arg0: memref<2x16xf32, #tpu.memory_space<vmem>>, %arg1: memref<16x64xf32, #tpu.memory_space<vmem>>, %arg2: memref<1x64xf32, #tpu.memory_space<vmem>>, %arg3: memref<2x64xf32, #tpu.memory_space<vmem>>) attributes {dimension_semantics = [], scalar_prefetch = 0 : i64, scratch_operands = 0 : i64, tpu.core_type = #tpu.core_type<tc>} {
    %c0 = arith.constant 0 : index
    %c0_0 = arith.constant 0 : index
    %0 = vector.load %arg0[%c0, %c0_0] : memref<2x16xf32, #tpu.memory_space<vmem>>, vector<2x16xf32>
    %c0_1 = arith.constant 0 : index
    %c0_2 = arith.constant 0 : index
    %1 = vector.load %arg1[%c0_1, %c0_2] : memref<16x64xf32, #tpu.memory_space<vmem>>, vector<16x64xf32>
    %cst = arith.constant dense<0.000000e+00> : vector<2x64xf32>
    %2 = tpu.matmul %0, %1, %cst {dimension_numbers = #tpu.dot_dimension_numbers<[1], [0], [0], [1], [0, 0, 1, 1], [], []>} : vector<2x16xf32>, vector<16x64xf32>, vector<2x64xf32> -> vector<2x64xf32>
    %c0_3 = arith.constant 0 : index
    %c0_4 = arith.constant 0 : index
    %3 = vector.load %arg2[%c0_3, %c0_4] : memref<1x64xf32, #tpu.memory_space<vmem>>, vector<1x64xf32>
    %4 = vector.broadcast %3 : vector<1x64xf32> to vector<2x64xf32>
    %5 = arith.addf %2, %4 : vector<2x64xf32>
    %6 = math.tanh %5 : vector<2x64xf32>
    %c0_5 = arith.constant 0 : index
    %c0_6 = arith.constant 0 : index
    %7 = vector.load %arg3[%c0_5, %c0_6] : memref<2x64xf32, #tpu.memory_space<vmem>>, vector<2x64xf32>
    tpu.vector_store %arg3[%c0_5, %c0_6], %6 {strides = array<i32>} : memref<2x64xf32, #tpu.memory_space<vmem>>, vector<2x64xf32>,
    return
  }
}

</mosaic_0001>

<bundles_post_ra>
// kernel: tpu_custom_call.1
= control target key start
LH: loop header
LB: loop body
LE: loop exit
PB: predicated region body
PF: predicated region fallthrough
CT: control target
= control target key end

     0   :  { %8 = vsyncpa [#allocation3], 0  ;;  %s270_s0 = inlined_call_operand.hbm [shape: f32[2,16], index: 0, kind: input, shape index: {}]   ;;  %s271_s1 = inlined_call_operand.hbm [shape: f32[16,64], index: 1, kind: input, shape index: {}]   ;;  %s272_s2 = inlined_call_operand.vmem [shape: f32[1,64], index: 2, kind: input, shape index: {}]   ;;  %s273_s3 = inlined_call_operand.hbm [shape: f32[2,64], index: 3, kind: output, shape index: {}]  }
   0x1   :  { %9 = vsyncpa [#allocation6], 0 }
   0x2   :  { %10 = vsyncpa [#allocation4], 0  ;;  %s231_s12 = smov [#allocation2]   ;;  %s232_s14 = smov [#allocation5]  }
   0x3   :  { %s17_s13 = sshll.u32 %s231_s12, 4  ;;  %s26_s15 = sshll.u32 %s232_s14, 4  ;;  %s18_s13 = int_to_ptr.vmem [resolvable:$true] %s17_s13  ;;  %s27_s15 = int_to_ptr.vmem [resolvable:$true] %s26_s15 }
   0x4   :  { %s173_s16 = scalar_lea.vmem %s18_s13, 32  ;;  %p178_p1 = scmp.lt.s32.totalorder %s18_s13, %s18_s13 }
   0x5   :  { %p174_p0 = scmp.ne.s32.totalorder %s18_s13, %s173_s16  ;;  %p179_p2 = scmp.lt.s32.totalorder %s173_s16, %s173_s16 }
   0x7   :  { %p180_p3 = por %p179_p2, %p178_p1 }
   0x9   :  { %p181_p4 = pnand %p180_p3, %p174_p0 }
   0xb   :  { %184 = shalt.err (!%p181_p4)
}
   0xc   :  { %20 = dma.hbm_to_vmem [thread:$0]  %s270_s0, 32, %s18_s13, [#allocation3]  }
   0xd   :  { %s193_s19 = scalar_lea.vmem %s27_s15, 256  ;;  %p198_p6 = scmp.lt.s32.totalorder %s27_s15, %s27_s15 }
   0xe   :  { %p194_p5 = scmp.ne.s32.totalorder %s27_s15, %s193_s19  ;;  %p199_p7 = scmp.lt.s32.totalorder %s193_s19, %s193_s19 }
  0x10   :  { %p200_p8 = por %p199_p7, %p198_p6 }
  0x12   :  { %p201_p9 = pnand %p200_p8, %p194_p5 }
  0x14   :  { %204 = shalt.err (!%p201_p9)
}
  0x15   :  { %s233_s20 = smov 128   ;;  %s234_s21 = smov 8  }
  0x16   :  { %32 = dma.hbm_to_vmem [thread:$0]  %s271_s1, 256, %s27_s15, [#allocation6], %s233_s20, %s233_s20, %s234_s21  }
  0x17   :  { %225 = dma.done.wait [#allocation3], 32  }
  0x18   :  { %226 = vsyncadd [#allocation3], 4294967264 }
  0x19   :  { %227 = dma.done.wait [#allocation6], 256  }
  0x1a   :  { %228 = vsyncadd [#allocation6], 4294967040  ;;  %v235_v0 = vmov 0.0   ;;  %vm236_vm0 = vmmov 0   ;;  %v43_v1 = vld [vmem:[#allocation5 + $0x8] sm:$0xff]  ;;  %v42_v2 = vld [vmem:[#allocation5] sm:$0xff] }
  0x1b   :  { %149 = vmatprep.subr.mxu0 %v235_v0  ;;  %153 = vmatprep.mubr.msk.f32.mxu0 %vm236_vm0, %v235_v0  ;;  %v41_v3 = vld [vmem:[#allocation2] sm:$0x3]  ;;  %vm51_vm1 = vcmask 130048   ;;  %s237_s1 = smov [#allocation7]   ;;  %vm126_vm2 = vcmask 517120  }
  0x1c   :  { %150 = vmatpush3.msra.mxu0 %v43_v1  ;;  %v144_v4 = vld [vmem:[%s272_s2] ss:$0 sm:$0xff]  ;;  %s134_s25 = sshll.u32 %s237_s1, 4  ;;  %s135_s25 = int_to_ptr.vmem [resolvable:$true] %s134_s25 }
  0x1d   :  { %151 = vmatprep.subr.mxu0 %v235_v0  ;;  %s205_s26 = scalar_lea.vmem %s135_s25, 32  ;;  %p210_p11 = scmp.lt.s32.totalorder %s135_s25, %s135_s25 }
  0x1e   :  { %152 = vmatpush3.msra.mxu0 %v42_v2  ;;  %p206_p10 = scmp.ne.s32.totalorder %s135_s25, %s205_s26  ;;  %p211_p12 = scmp.lt.s32.totalorder %s205_s26, %s205_s26 }
  0x1f   :  { %154 = vmatmul.mubr.msk.f32.vlgmr.msra.gmra.mxu0 %vm51_vm1, %v41_v3 }
  0x20   :  { %p212_p13 = por %p211_p12, %p210_p11 }
  0x22   :  { %p213_p0 = pnand %p212_p13, %p206_p10 }
  0xdf   :  { %v121_v5 = vpop.f32.mrf.mxu0 }
  0xe0   :  { %v122_v6 = vadd.f32 %v144_v4, %v121_v5 }
  0xe1   :  { %v155_v7 = vpop.f32.mrf.mxu0 }
  0xe2   :  { %163 = vtanh.f32 %v122_v6 }
  0xef   :  { %v164_v8 = vpop.eup %163 }
  0xf0   :  { %127 = vst.msk [vmem:[#allocation7] sm:$0x3] %vm126_vm2, %v164_v8 }
  0xf1   :  { %216 = shalt.err (!%p213_p0)
}
  0xf2   :  { %137 = dma.vmem_to_hbm [thread:$0]  %s135_s25, 32, %s273_s3, [#allocation4]  }
  0xf3   :  { %229 = dma.done.wait [#allocation4], 32  }
  0xf4   :  { %230 = vsyncadd [#allocation4], 4294967264 }
  0xf5   :  { %141 = vsyncpa [#allocation3], 1 }
  0xf6   :  { %142 = vsyncpa [#allocation6], 1 }
  0xf7   :  { %143 = vsyncpa [#allocation4], 1 }

</bundles_post_ra>
